<compile_context>
chip_gen: v7x
topology: tpu7x:2x2x1
jax: 0.10.0
libtpu: 0.0.40
codegen_flags: <defaults>
</compile_context>

<pallas_src>
import functools

import jax
import jax.numpy as jnp
from jax import lax
from jax.experimental import pallas as pl
from jax.experimental.pallas import tpu as pltpu

FILTER_SIZES = (2, 3, 4)
FS_MAX = max(FILTER_SIZES)
FS_MIN = min(FILTER_SIZES)
_PAD_ROWS = 8          # zero rows appended to the embedding scratch slab


def _round_up(x, m):
    return ((x + m - 1) // m) * m


def _cnn_kernel(TB, S_PAD, H, V_PAD, NF_PAD,
                ids_ref,      # [TB*S_PAD, 1]       int32 (per-tile VMEM)
                tab_ref,      # [V_PAD, H]           bf16 (grid-invariant)
                wconv_ref,    # [FS_MAX*H, NF_PAD]   bf16
                bconv_ref,    # [1, NF_PAD]          f32
                mask_ref,     # [TB*S_PAD, NF_PAD]   f32  (1 = valid position)
                wfc_ref,      # [NF_PAD, C_PAD]      bf16
                bfc_ref,      # [1, C_PAD]           f32
                out_ref,      # [TB, C_PAD]          f32
                emb_scr):     # [TB*S_PAD + 8, H]    f32 scratch
    R = TB * S_PAD

    # ---- Vectorized embedding gather: one-hot(ids) @ table on the MXU. ----
    # Padded batch / sequence positions carry the sentinel id V_PAD which can
    # never match the iota, so their embedding rows are exactly zero.
    ids = ids_ref[...]                                            # [R, 1] int32
    vocab_iota = lax.broadcasted_iota(jnp.int32, (R, V_PAD), 1)
    onehot = jnp.where(vocab_iota == ids, 1.0, 0.0).astype(jnp.bfloat16)
    emb = jnp.dot(onehot, tab_ref[...],
                  preferred_element_type=jnp.float32)             # [R, H] f32

    # Stage into scratch with _PAD_ROWS trailing zero rows so the shifted
    # loads below stay in-bounds and the zero-padded filter rows always
    # contract against exact zeros (never stale / NaN VMEM).
    emb_scr[pl.ds(0, R), :] = emb
    emb_scr[pl.ds(R, _PAD_ROWS), :] = jnp.zeros((_PAD_ROWS, H), jnp.float32)

    # ---- Fused conv: FS_MAX shifted-accumulate matmuls (no im2col copy). ----
    acc = None
    for j in range(FS_MAX):
        lhs = emb_scr[pl.ds(j, R), :].astype(jnp.bfloat16)        # [R, H]
        term = jnp.dot(lhs, wconv_ref[j * H:(j + 1) * H, :],
                       preferred_element_type=jnp.float32)        # [R, NF_PAD]
        acc = term if acc is None else acc + term

    # relu, then zero out invalid positions (l >= S - fs + 1 for each branch,
    # and the lane-padding columns).  relu >= 0 so 0 is a neutral element for
    # the subsequent max pool.
    conved = jnp.maximum(acc + bconv_ref[...], 0.0) * mask_ref[...]   # [R, NF_PAD]
    pooled = jnp.max(conved.reshape(TB, S_PAD, NF_PAD), axis=1)       # [TB, NF_PAD]

    # ---- Fused "concat + fc" (Dropout p=0.1 is eval-mode identity). ----
    # TODO(synk): training-mode dropout would need pltpu.prng_* masking here.
    out_ref[...] = (jnp.dot(pooled.astype(jnp.bfloat16), wfc_ref[...],
                            preferred_element_type=jnp.float32)
                    + bfc_ref[...])


def cnn_classifier_forward(input_ids, params, *, batch_tile=None):
    """Forward pass equivalent to CNNClassifier.forward (eval mode)."""
    emb_tab = params['embedding']
    V, H = emb_tab.shape
    F = params['conv_b'][0].shape[-1]
    NF = len(FILTER_SIZES) * F
    C = params['fc_b'].shape[-1]

    B, S = input_ids.shape
    assert S >= FS_MAX, "sequence must be >= max filter size"

    # Pad every tiled dimension to the hardware tile: lanes to 128, sublanes
    # to 8.  The MXU pads internally anyway, so the extra FLOPs are free, and
    # all intermediates become full-vreg (unmasked) traffic.
    S_PAD = _round_up(S + (FS_MAX - FS_MIN), 8)       # per-sequence row block
    V_PAD = _round_up(V, 128)
    NF_PAD = _round_up(NF, 128)
    C_PAD = _round_up(C, 128)

    TB = batch_tile if batch_tile is not None else max(8, min(64, _round_up(B, 8)))
    B_PAD = _round_up(B, TB)
    R = TB * S_PAD

    # Fused conv weight: zero-pad each [fs, H, F] filter to FS_MAX rows,
    # concat along the filter axis, pad filters to NF_PAD lanes, flatten to a
    # single [FS_MAX*H, NF_PAD] weight (bf16 inputs, f32 accumulate).
    w_fused = jnp.concatenate(
        [jnp.pad(w, ((0, FS_MAX - fs), (0, 0), (0, 0)))
         for w, fs in zip(params['conv_w'], FILTER_SIZES)], axis=-1)
    w_fused = jnp.pad(w_fused, ((0, 0), (0, 0), (0, NF_PAD - NF)))
    w_fused = w_fused.reshape(FS_MAX * H, NF_PAD).astype(jnp.bfloat16)
    b_fused = jnp.pad(jnp.concatenate(params['conv_b'], axis=-1),
                      ((0, 0), (0, NF_PAD - NF))).astype(jnp.float32)

    wfc = jnp.pad(params['fc_w'],
                  ((0, NF_PAD - NF), (0, C_PAD - C))).astype(jnp.bfloat16)
    bfc = jnp.pad(params['fc_b'], ((0, 0), (0, C_PAD - C))).astype(jnp.float32)

    # TODO(synk): for large vocabularies (V*H*2 bytes ~ tens of MiB; v7x VMEM
    # is 64 MiB) keep the table in HBM (memory_space=pl.ANY) + row DMA, and
    # mark grid-invariant operands with pipeline_mode=pl.Buffered(1).
    tab = jnp.pad(emb_tab, ((0, V_PAD - V), (0, 0))).astype(jnp.bfloat16)

    # Precomputed validity mask (grid-invariant): position l of branch fs is a
    # real conv output iff l < S - fs + 1; lane-padding columns never are.
    limit_cols = jnp.concatenate(
        [jnp.full((F,), S - fs + 1, jnp.int32) for fs in FILTER_SIZES]
        + [jnp.zeros((NF_PAD - NF,), jnp.int32)])
    pos = jnp.arange(S_PAD, dtype=jnp.int32)
    mask = jnp.tile((pos[:, None] < limit_cols[None, :]).astype(jnp.float32),
                    (TB, 1))                                       # [R, NF_PAD]

    # Token ids: pad batch / sequence with the out-of-range sentinel V_PAD so
    # padded positions gather an exactly-zero embedding row.
    ids = jnp.full((B_PAD, S_PAD), V_PAD, jnp.int32)
    ids = ids.at[:B, :S].set(input_ids.astype(jnp.int32))
    ids = ids.reshape(B_PAD * S_PAD, 1)

    kernel = functools.partial(_cnn_kernel, TB, S_PAD, H, V_PAD, NF_PAD)

    steps = B_PAD // TB
    flops = 2 * steps * (R * V_PAD * H + FS_MAX * R * H * NF_PAD
                         + TB * NF_PAD * C_PAD)
    bytes_accessed = (ids.size * 4 + B_PAD * C_PAD * 4
                      + steps * (tab.size * 2 + w_fused.size * 2
                                 + b_fused.size * 4 + mask.size * 4
                                 + wfc.size * 2 + bfc.size * 4))

    out = pl.pallas_call(
        kernel,
        out_shape=jax.ShapeDtypeStruct((B_PAD, C_PAD), jnp.float32),
        grid_spec=pltpu.PrefetchScalarGridSpec(
            num_scalar_prefetch=0,
            grid=(steps,),
            in_specs=[
                pl.BlockSpec((R, 1), lambda b: (b, 0)),                 # ids
                pl.BlockSpec((V_PAD, H), lambda b: (0, 0)),             # table
                pl.BlockSpec((FS_MAX * H, NF_PAD), lambda b: (0, 0)),   # conv w
                pl.BlockSpec((1, NF_PAD), lambda b: (0, 0)),            # conv b
                pl.BlockSpec((R, NF_PAD), lambda b: (0, 0)),            # mask
                pl.BlockSpec((NF_PAD, C_PAD), lambda b: (0, 0)),        # fc w
                pl.BlockSpec((1, C_PAD), lambda b: (0, 0)),             # fc b
            ],
            out_specs=pl.BlockSpec((TB, C_PAD), lambda b: (b, 0)),
            scratch_shapes=[pltpu.VMEM((R + _PAD_ROWS, H), jnp.float32)],
        ),
        compiler_params=pltpu.CompilerParams(
            dimension_semantics=("parallel",)),
        cost_estimate=pl.CostEstimate(flops=flops, transcendentals=0,
                                      bytes_accessed=bytes_accessed),
    )(ids, tab, w_fused, b_fused, mask, wfc, bfc)

    return out[:B, :C]


def init_params(key, vocab_size=50, hidden_size=32, n_filters=16,
                filter_sizes=FILTER_SIZES, num_classes=6):
    keys = jax.random.split(key, 3 + 2 * len(filter_sizes))
    emb = 0.02 * jax.random.normal(keys[0], (vocab_size, hidden_size), jnp.float32)
    emb = emb.at[0].set(0.0)                         # padding_idx=0 -> zero row
    conv_w, conv_b = [], []
    for i, fs in enumerate(filter_sizes):
        kw, kb = keys[1 + 2 * i], keys[2 + 2 * i]
        fan_in = 1 * fs * hidden_size
        bound = 1.0 / (fan_in ** 0.5)
        conv_w.append(jax.random.uniform(kw, (fs, hidden_size, n_filters),
                                         jnp.float32, -bound, bound))
        conv_b.append(jax.random.uniform(kb, (1, n_filters),
                                         jnp.float32, -bound, bound))
    fan_in_fc = len(filter_sizes) * n_filters
    bound = 1.0 / (fan_in_fc ** 0.5)
    fc_w = jax.random.uniform(keys[-2], (fan_in_fc, num_classes),
                              jnp.float32, -bound, bound)
    fc_b = jax.random.uniform(keys[-1], (1, num_classes),
                              jnp.float32, -bound, bound)
    return {'embedding': emb, 'conv_w': conv_w, 'conv_b': conv_b,
            'fc_w': fc_w, 'fc_b': fc_b}


def reference_forward(input_ids, params):
    """Pure-JAX reference mirroring the PyTorch forward (eval mode), with the
    same bf16-weight / f32-accumulate precision policy as the kernel."""
    emb = jnp.take(params['embedding'].astype(jnp.bfloat16),
                   input_ids, axis=0)                         # [B, S, H] bf16
    B, S, H = emb.shape
    pooled_list = []
    for i, fs in enumerate(FILTER_SIZES):
        w = params['conv_w'][i].astype(jnp.bfloat16)          # [fs, H, F]
        b = params['conv_b'][i].astype(jnp.float32)           # [1, F]
        Lf = S - fs + 1
        acc = jnp.zeros((B, Lf, w.shape[-1]), jnp.float32)
        for j in range(fs):
            acc = acc + jnp.einsum('blh,hf->blf', emb[:, j:j + Lf, :], w[j],
                                   preferred_element_type=jnp.float32)
        conved = jax.nn.relu(acc + b[None, :, :])
        pooled_list.append(jnp.max(conved, axis=1))
    cat = jnp.concatenate(pooled_list, axis=1)                # [B, 3F] f32
    return (jnp.dot(cat.astype(jnp.bfloat16),
                    params['fc_w'].astype(jnp.bfloat16),
                    preferred_element_type=jnp.float32)
            + params['fc_b'].astype(jnp.float32))


if __name__ == "__main__":
    key = jax.random.PRNGKey(0)
    pkey, dkey = jax.random.split(key)
    params = init_params(pkey)

    B, S = 2, 10                                     # seq >= max filter size (4)
    input_ids = jax.random.randint(dkey, (B, S), 0, 50, dtype=jnp.int32)

    out = cnn_classifier_forward(input_ids, params)
    out = jax.block_until_ready(out)

    ref = reference_forward(input_ids, params)
    assert out.shape == (B, 6), out.shape
    assert jnp.allclose(out, ref, atol=2e-3, rtol=2e-3), (out, ref)
    print("KERNEL_OK")
</pallas_src>

<mosaic_0001>
module attributes {stable_mosaic.version = 11 : i64} {
  func.func @_cnn_kernel(%arg0: i32, %arg1: memref<128x1xi32, #tpu.memory_space<vmem>>, %arg2: memref<128x32xbf16, #tpu.memory_space<vmem>>, %arg3: memref<128x128xbf16, #tpu.memory_space<vmem>>, %arg4: memref<1x128xf32, #tpu.memory_space<vmem>>, %arg5: memref<128x128xf32, #tpu.memory_space<vmem>>, %arg6: memref<128x128xbf16, #tpu.memory_space<vmem>>, %arg7: memref<1x128xf32, #tpu.memory_space<vmem>>, %arg8: memref<8x128xf32, #tpu.memory_space<vmem>>, %arg9: memref<136x32xf32, #tpu.memory_space<vmem>>) attributes {dimension_semantics = [#tpu.dimension_semantics<parallel>], iteration_bounds = array<i64: 1>, scalar_prefetch = 0 : i64, scratch_operands = 1 : i64, tpu.core_type = #tpu.core_type<tc>, window_params = [{transform_indices = @transform_0, window_bounds = array<i64: 128, 1>}, {pipeline_mode = #tpu.pipeline_mode<synchronous>, transform_indices = @transform_1, window_bounds = array<i64: 128, 32>}, {pipeline_mode = #tpu.pipeline_mode<synchronous>, transform_indices = @transform_2, window_bounds = array<i64: 128, 128>}, {pipeline_mode = #tpu.pipeline_mode<synchronous>, transform_indices = @transform_3, window_bounds = array<i64: 1, 128>}, {pipeline_mode = #tpu.pipeline_mode<synchronous>, transform_indices = @transform_4, window_bounds = array<i64: 128, 128>}, {pipeline_mode = #tpu.pipeline_mode<synchronous>, transform_indices = @transform_5, window_bounds = array<i64: 128, 128>}, {pipeline_mode = #tpu.pipeline_mode<synchronous>, transform_indices = @transform_6, window_bounds = array<i64: 1, 128>}, {transform_indices = @transform_7, window_bounds = array<i64: 8, 128>}]} {
    %c0 = arith.constant 0 : index
    %c0_0 = arith.constant 0 : index
    %0 = vector.load %arg1[%c0, %c0_0] : memref<128x1xi32, #tpu.memory_space<vmem>>, vector<128x1xi32>
    %1 = tpu.iota {dimensions = array<i32: 1>} : vector<128x128xi32>
    %2 = vector.broadcast %0 : vector<128x1xi32> to vector<128x128xi32>
    %3 = arith.cmpi eq, %1, %2 : vector<128x128xi32>
    %cst = arith.constant 1.000000e+00 : f32
    %cst_1 = arith.constant 0.000000e+00 : f32
    %4 = vector.broadcast %cst : f32 to vector<128x128xf32>
    %5 = vector.broadcast %cst_1 : f32 to vector<128x128xf32>
    %6 = arith.select %3, %4, %5 : vector<128x128xi1>, vector<128x128xf32>
    %7 = arith.truncf %6 : vector<128x128xf32> to vector<128x128xbf16>
    %c0_2 = arith.constant 0 : index
    %c0_3 = arith.constant 0 : index
    %8 = vector.load %arg2[%c0_2, %c0_3] : memref<128x32xbf16, #tpu.memory_space<vmem>>, vector<128x32xbf16>
    %cst_4 = arith.constant dense<0.000000e+00> : vector<128x32xf32>
    %9 = tpu.matmul %7, %8, %cst_4 {dimension_numbers = #tpu.dot_dimension_numbers<[1], [0], [0], [1], [0, 0, 1, 1], [], []>} : vector<128x128xbf16>, vector<128x32xbf16>, vector<128x32xf32> -> vector<128x32xf32>
    %c0_5 = arith.constant 0 : index
    %c0_6 = arith.constant 0 : index
    %10 = vector.load %arg9[%c0_5, %c0_6] : memref<136x32xf32, #tpu.memory_space<vmem>>, vector<128x32xf32>
    tpu.vector_store %arg9[%c0_5, %c0_6], %9 {strides = array<i32>} : memref<136x32xf32, #tpu.memory_space<vmem>>, vector<128x32xf32>,
    %cst_7 = arith.constant 0.000000e+00 : f32
    %11 = vector.broadcast %cst_7 : f32 to vector<8x32xf32>
    %c128 = arith.constant 128 : index
    %c0_8 = arith.constant 0 : index
    %12 = vector.load %arg9[%c128, %c0_8] : memref<136x32xf32, #tpu.memory_space<vmem>>, vector<8x32xf32>
    tpu.vector_store %arg9[%c128, %c0_8], %11 {strides = array<i32>} : memref<136x32xf32, #tpu.memory_space<vmem>>, vector<8x32xf32>,
    %c0_9 = arith.constant 0 : index
    %c0_10 = arith.constant 0 : index
    %13 = vector.load %arg9[%c0_9, %c0_10] : memref<136x32xf32, #tpu.memory_space<vmem>>, vector<128x32xf32>
    %14 = arith.truncf %13 : vector<128x32xf32> to vector<128x32xbf16>
    %c0_11 = arith.constant 0 : index
    %c0_12 = arith.constant 0 : index
    %15 = vector.load %arg3[%c0_11, %c0_12] : memref<128x128xbf16, #tpu.memory_space<vmem>>, vector<32x128xbf16>
    %cst_13 = arith.constant dense<0.000000e+00> : vector<128x128xf32>
    %16 = tpu.matmul %14, %15, %cst_13 {dimension_numbers = #tpu.dot_dimension_numbers<[1], [0], [0], [1], [0, 0, 1, 1], [], []>} : vector<128x32xbf16>, vector<32x128xbf16>, vector<128x128xf32> -> vector<128x128xf32>
    %c1 = arith.constant 1 : index
    %c0_14 = arith.constant 0 : index
    %17 = vector.load %arg9[%c1, %c0_14] : memref<136x32xf32, #tpu.memory_space<vmem>>, vector<128x32xf32>
    %18 = arith.truncf %17 : vector<128x32xf32> to vector<128x32xbf16>
    %c32 = arith.constant 32 : index
    %c0_15 = arith.constant 0 : index
    %19 = vector.load %arg3[%c32, %c0_15] : memref<128x128xbf16, #tpu.memory_space<vmem>>, vector<32x128xbf16>
    %cst_16 = arith.constant dense<0.000000e+00> : vector<128x128xf32>
    %20 = tpu.matmul %18, %19, %cst_16 {dimension_numbers = #tpu.dot_dimension_numbers<[1], [0], [0], [1], [0, 0, 1, 1], [], []>} : vector<128x32xbf16>, vector<32x128xbf16>, vector<128x128xf32> -> vector<128x128xf32>
    %21 = arith.addf %16, %20 : vector<128x128xf32>
    %c2 = arith.constant 2 : index
    %c0_17 = arith.constant 0 : index
    %22 = vector.load %arg9[%c2, %c0_17] : memref<136x32xf32, #tpu.memory_space<vmem>>, vector<128x32xf32>
    %23 = arith.truncf %22 : vector<128x32xf32> to vector<128x32xbf16>
    %c64 = arith.constant 64 : index
    %c0_18 = arith.constant 0 : index
    %24 = vector.load %arg3[%c64, %c0_18] : memref<128x128xbf16, #tpu.memory_space<vmem>>, vector<32x128xbf16>
    %cst_19 = arith.constant dense<0.000000e+00> : vector<128x128xf32>
    %25 = tpu.matmul %23, %24, %cst_19 {dimension_numbers = #tpu.dot_dimension_numbers<[1], [0], [0], [1], [0, 0, 1, 1], [], []>} : vector<128x32xbf16>, vector<32x128xbf16>, vector<128x128xf32> -> vector<128x128xf32>
    %26 = arith.addf %21, %25 : vector<128x128xf32>
    %c3 = arith.constant 3 : index
    %c0_20 = arith.constant 0 : index
    %27 = vector.load %arg9[%c3, %c0_20] : memref<136x32xf32, #tpu.memory_space<vmem>>, vector<128x32xf32>
    %28 = arith.truncf %27 : vector<128x32xf32> to vector<128x32xbf16>
    %c96 = arith.constant 96 : index
    %c0_21 = arith.constant 0 : index
    %29 = vector.load %arg3[%c96, %c0_21] : memref<128x128xbf16, #tpu.memory_space<vmem>>, vector<32x128xbf16>
    %cst_22 = arith.constant dense<0.000000e+00> : vector<128x128xf32>
    %30 = tpu.matmul %28, %29, %cst_22 {dimension_numbers = #tpu.dot_dimension_numbers<[1], [0], [0], [1], [0, 0, 1, 1], [], []>} : vector<128x32xbf16>, vector<32x128xbf16>, vector<128x128xf32> -> vector<128x128xf32>
    %31 = arith.addf %26, %30 : vector<128x128xf32>
    %c0_23 = arith.constant 0 : index
    %c0_24 = arith.constant 0 : index
    %32 = vector.load %arg4[%c0_23, %c0_24] : memref<1x128xf32, #tpu.memory_space<vmem>>, vector<1x128xf32>
    %33 = vector.broadcast %32 : vector<1x128xf32> to vector<128x128xf32>
    %34 = arith.addf %31, %33 : vector<128x128xf32>
    %cst_25 = arith.constant 0.000000e+00 : f32
    %35 = vector.broadcast %cst_25 : f32 to vector<128x128xf32>
    %36 = arith.maximumf %34, %35 : vector<128x128xf32>
    %c0_26 = arith.constant 0 : index
    %c0_27 = arith.constant 0 : index
    %37 = vector.load %arg5[%c0_26, %c0_27] : memref<128x128xf32, #tpu.memory_space<vmem>>, vector<128x128xf32>
    %38 = arith.mulf %36, %37 : vector<128x128xf32>
    %39 = vector.shape_cast %38 : vector<128x128xf32> to vector<8x16x128xf32>
    %cst_28 = arith.constant dense<0xFF800000> : vector<8x128xf32>
    %40 = vector.multi_reduction <maximumf>, %39, %cst_28 [1] : vector<8x16x128xf32> to vector<8x128xf32>
    %41 = arith.truncf %40 : vector<8x128xf32> to vector<8x128xbf16>
    %c0_29 = arith.constant 0 : index
    %c0_30 = arith.constant 0 : index
    %42 = vector.load %arg6[%c0_29, %c0_30] : memref<128x128xbf16, #tpu.memory_space<vmem>>, vector<128x128xbf16>
    %cst_31 = arith.constant dense<0.000000e+00> : vector<8x128xf32>
    %43 = tpu.matmul %41, %42, %cst_31 {dimension_numbers = #tpu.dot_dimension_numbers<[1], [0], [0], [1], [0, 0, 1, 1], [], []>} : vector<8x128xbf16>, vector<128x128xbf16>, vector<8x128xf32> -> vector<8x128xf32>
    %c0_32 = arith.constant 0 : index
    %c0_33 = arith.constant 0 : index
    %44 = vector.load %arg7[%c0_32, %c0_33] : memref<1x128xf32, #tpu.memory_space<vmem>>, vector<1x128xf32>
    %45 = vector.broadcast %44 : vector<1x128xf32> to vector<8x128xf32>
    %46 = arith.addf %43, %45 : vector<8x128xf32>
    %c0_34 = arith.constant 0 : index
    %c0_35 = arith.constant 0 : index
    %47 = vector.load %arg8[%c0_34, %c0_35] : memref<8x128xf32, #tpu.memory_space<vmem>>, vector<8x128xf32>
    tpu.vector_store %arg8[%c0_34, %c0_35], %46 {strides = array<i32>} : memref<8x128xf32, #tpu.memory_space<vmem>>, vector<8x128xf32>,
    return
  }
  func.func @transform_0(%arg0: i32) -> (i32, i32) {
    %c0_i32 = arith.constant 0 : i32
    %c0_i32_0 = arith.constant 0 : i32
    return %arg0, %c0_i32 : i32, i32
  }
  func.func @transform_1(%arg0: i32) -> (i32, i32) {
    %c0_i32 = arith.constant 0 : i32
    %c0_i32_0 = arith.constant 0 : i32
    %c0_i32_1 = arith.constant 0 : i32
    return %c0_i32, %c0_i32_0 : i32, i32
  }
  func.func @transform_2(%arg0: i32) -> (i32, i32) {
    %c0_i32 = arith.constant 0 : i32
    %c0_i32_0 = arith.constant 0 : i32
    %c0_i32_1 = arith.constant 0 : i32
    return %c0_i32, %c0_i32_0 : i32, i32
  }
  func.func @transform_3(%arg0: i32) -> (i32, i32) {
    %c0_i32 = arith.constant 0 : i32
    %c0_i32_0 = arith.constant 0 : i32
    %c0_i32_1 = arith.constant 0 : i32
    return %c0_i32, %c0_i32_0 : i32, i32
  }
  func.func @transform_4(%arg0: i32) -> (i32, i32) {
    %c0_i32 = arith.constant 0 : i32
    %c0_i32_0 = arith.constant 0 : i32
    %c0_i32_1 = arith.constant 0 : i32
    return %c0_i32, %c0_i32_0 : i32, i32
  }
  func.func @transform_5(%arg0: i32) -> (i32, i32) {
    %c0_i32 = arith.constant 0 : i32
    %c0_i32_0 = arith.constant 0 : i32
    %c0_i32_1 = arith.constant 0 : i32
    return %c0_i32, %c0_i32_0 : i32, i32
  }
  func.func @transform_6(%arg0: i32) -> (i32, i32) {
    %c0_i32 = arith.constant 0 : i32
    %c0_i32_0 = arith.constant 0 : i32
    %c0_i32_1 = arith.constant 0 : i32
    return %c0_i32, %c0_i32_0 : i32, i32
  }
  func.func @transform_7(%arg0: i32) -> (i32, i32) {
    %c0_i32 = arith.constant 0 : i32
    %c0_i32_0 = arith.constant 0 : i32
    return %arg0, %c0_i32 : i32, i32
  }
}

</mosaic_0001>

<bundles_post_ra>
// kernel: tpu_custom_call.1
= control target key start
LH: loop header
LB: loop body
LE: loop exit
PB: predicated region body
PF: predicated region fallthrough
CT: control target
= control target key end

     0   :  { %12 = vsyncpa [#allocation4], 0  ;;  %s2026_s0 = inlined_call_operand.vmem [shape: s32[128,1], index: 0, kind: input, shape index: {}]   ;;  %s2027_s1 = inlined_call_operand.vmem [shape: bf16[128,32], index: 1, kind: input, shape index: {}]   ;;  %s2028_s2 = inlined_call_operand.vmem [shape: bf16[128,128], index: 2, kind: input, shape index: {}]   ;;  %s2029_s3 = inlined_call_operand.vmem [shape: f32[1,128], index: 3, kind: input, shape index: {}]   ;;  %s2030_s4 = inlined_call_operand.vmem [shape: f32[128,128], index: 4, kind: input, shape index: {}]   ;;  %s2031_s5 = inlined_call_operand.hbm [shape: bf16[128,128], index: 5, kind: input, shape index: {}]   ;;  %s2032_s6 = inlined_call_operand.vmem [shape: f32[1,128], index: 6, kind: input, shape index: {}]   ;;  %s2033_s7 = inlined_call_operand.hbm [shape: f32[8,128], index: 7, kind: output, shape index: {}]  }
   0x1   :  { %13 = vsyncpa [#allocation5], 0  ;;  %s1698_s24 = smov [#allocation3]   ;;  %s1650_s28 = scalar_lea.hbm %s2031_s5, 1024 }
   0x2   :  { %s29_s25 = sshll.u32 %s1698_s24, 4  ;;  %p1651_p0 = scmp.ne.s32.totalorder %s2031_s5, %s1650_s28  ;;  %s30_s25 = int_to_ptr.vmem [resolvable:$true] %s29_s25 }
   0x3   :  { %p1654_p1 = scmp.lt.u32.totalorder %s1650_s28, %s2031_s5 }
   0x5   :  { %p1656_p2 = pnand %p1654_p1, %p1651_p0 }
   0x7   :  { %1659 = shalt.err (!%p1656_p2)
}
   0x8   :  { %s1660_s10 = scalar_lea.vmem %s30_s25, 1024  ;;  %p1665_p4 = scmp.lt.s32.totalorder %s30_s25, %s30_s25 }
   0x9   :  { %p1661_p3 = scmp.ne.s32.totalorder %s30_s25, %s1660_s10  ;;  %p1666_p5 = scmp.lt.s32.totalorder %s1660_s10, %s1660_s10 }
   0xb   :  { %p1667_p6 = por %p1666_p5, %p1665_p4 }
   0xd   :  { %p1668_p7 = pnand %p1667_p6, %p1661_p3 }
   0xf   :  { %1671 = shalt.err (!%p1668_p7)
}
  0x10   :  { %s1699_s11 = smov 64   ;;  %s1700_s12 = smov 4  }
  0x11   :  { %35 = dma.hbm_to_vmem [thread:$0]  %s2031_s5, 1024, %s30_s25, [#allocation4], %s1699_s11, %s1699_s11, %s1700_s12  }
  0x12   :  { %1694 = dma.done.wait [#allocation4], 1024  }
  0x13   :  { %1695 = vsyncadd [#allocation4], 4294966272  ;;  %v1701_v0 = vmov 0   ;;  %v44_v1 = vld [vmem:[%s2026_s0 + $0x10] sm:$0xff]  ;;  %v42_v2 = vld [vmem:[%s2026_s0] sm:$0xff]  ;;  %v58_v25 = vlaneseq  ;;  %v1703_v49 = vmov 0.0  }
  0x14   :  { %1625 = vset.pattern.permute.xlu1 %v1701_v0  ;;  %1624 = vset.pattern.permute.xlu0 %v1701_v0  ;;  %v45_v3 = vld [vmem:[%s2026_s0 + $0x18] sm:$0xff]  ;;  %v43_v4 = vld [vmem:[%s2026_s0 + $0x8] sm:$0xff]  ;;  %v46_v6 = vld [vmem:[%s2026_s0 + $0x20] sm:$0xff]  ;;  %v1702_v31 = vmov 1.0|1.0   ;;  %s1705_s10 = smov [#allocation6]  }
  0x15   :  { %67 = vperm.xlu1 %1625, %v44_v1   ;;  %61 = vperm.xlu0 %1624, %v42_v2   ;;  %v47_v5 = vld [vmem:[%s2026_s0 + $0x28] sm:$0xff]  ;;  %v1626_v7 = vld [vmem:[%s2027_s1] sm:$0xff]   ;;  %v49_v9 = vld [vmem:[%s2026_s0 + $0x38] sm:$0xff]  ;;  %v59_v28 = vand.u32 127, %v58_v25  ;;  %s1288_s11 = sshll.u32 %s1705_s10, 4  ;;  %s1289_s11 = int_to_ptr.vmem [resolvable:$true] %s1288_s11 }
  0x16   :  { %v1627_v8 = vld [vmem:[%s2027_s1 + $0x8] sm:$0xff]   ;;  %1436 = vmatprep.subr.bf16.mxu0 %v1626_v7  ;;  %v48_v10 = vld [vmem:[%s2026_s0 + $0x30] sm:$0xff]  ;;  %v50_v13 = vld [vmem:[%s2026_s0 + $0x40] sm:$0xff]  ;;  %s1672_s12 = scalar_lea.vmem %s1289_s11, 128  ;;  %p1677_p9 = scmp.lt.s32.totalorder %s1289_s11, %s1289_s11 }
  0x17   :  { %1437 = vmatpush3.bf16.msra.mxu0 %v1626_v7  ;;  %v1628_v11 = vld [vmem:[%s2027_s1 + $0x10] sm:$0xff]   ;;  %v51_v12 = vld [vmem:[%s2026_s0 + $0x48] sm:$0xff]  ;;  %v1629_v14 = vld [vmem:[%s2027_s1 + $0x18] sm:$0xff]   ;;  %p1673_p8 = scmp.ne.s32.totalorder %s1289_s11, %s1672_s12  ;;  %p1678_p10 = scmp.lt.s32.totalorder %s1672_s12, %s1672_s12 }
  0x18   :  { %1438 = vmatprep.subr.bf16.mxu0 %v1627_v8  ;;  %v53_v15 = vld [vmem:[%s2026_s0 + $0x58] sm:$0xff]  ;;  %v52_v16 = vld [vmem:[%s2026_s0 + $0x50] sm:$0xff]  ;;  %v1630_v17 = vld [vmem:[%s2027_s1 + $0x20] sm:$0xff]  }
  0x19   :  { %70 = vperm.xlu1 %1625, %v45_v3   ;;  %64 = vperm.xlu0 %1624, %v43_v4   ;;  %v55_v18 = vld [vmem:[%s2026_s0 + $0x68] sm:$0xff]  ;;  %v54_v19 = vld [vmem:[%s2026_s0 + $0x60] sm:$0xff]  ;;  %v57_v21 = vld [vmem:[%s2026_s0 + $0x78] sm:$0xff]  ;;  %p1679_p11 = por %p1678_p10, %p1677_p9 }
  0x1a   :  { %v1631_v20 = vld [vmem:[%s2027_s1 + $0x28] sm:$0xff]   ;;  %v56_v22 = vld [vmem:[%s2026_s0 + $0x70] sm:$0xff]  ;;  %v1633_v24 = vld [vmem:[%s2027_s1 + $0x38] sm:$0xff]  }
  0x1b   :  { %1439 = vmatpush3.bf16.msra.mxu0 %v1627_v8  ;;  %v1632_v23 = vld [vmem:[%s2027_s1 + $0x30] sm:$0xff]   ;;  %v1634_v44 = vld [vmem:[%s2028_s2] sm:$0xff]   ;;  %v1635_v45 = vld [vmem:[%s2028_s2 + $0x8] sm:$0xff]   ;;  %p1680_p12 = pnand %p1679_p11, %p1673_p8 }
  0x1c   :  { %1440 = vmatprep.subr.bf16.mxu0 %v1628_v11  ;;  %1488 = vmatprep.subr.bf16.mxu1 %v1634_v44  ;;  %v1636_v46 = vld [vmem:[%s2028_s2 + $0x10] sm:$0xff]   ;;  %v1637_v47 = vld [vmem:[%s2028_s2 + $0x20] sm:$0xff]   ;;  %v1638_v48 = vld [vmem:[%s2028_s2 + $0x18] sm:$0xff]  }
  0x1d   :  { %76 = vperm.xlu1 %1625, %v47_v5   ;;  %73 = vperm.xlu0 %1624, %v46_v6   ;;  %v1639_v3 = vld [vmem:[%s2028_s2 + $0x28] sm:$0xff]   ;;  %v1866_v8 = vld [vmem:[%s2028_s2 + $0x30] sm:$0xff]  }
  0x1e   :  { %1489 = vmatpush3.bf16.msra.mxu1 %v1634_v44 }
  0x1f   :  { %1441 = vmatpush3.bf16.msra.mxu0 %v1628_v11  ;;  %1490 = vmatprep.subr.bf16.mxu1 %v1635_v45 }
  0x20   :  { %1442 = vmatprep.subr.bf16.mxu0 %v1629_v14 }
  0x21   :  { %82 = vperm.xlu1 %1625, %v49_v9   ;;  %79 = vperm.xlu0 %1624, %v48_v10  }
  0x22   :  { %1491 = vmatpush3.bf16.msra.mxu1 %v1635_v45 }
  0x23   :  { %1443 = vmatpush3.bf16.msra.mxu0 %v1629_v14  ;;  %1508 = vmatprep.subr.bf16.mxu1 %v1637_v47 }
  0x24   :  { %1444 = vmatprep.subr.bf16.mxu0 %v1630_v17 }
  0x25   :  { %88 = vperm.xlu1 %1625, %v51_v12   ;;  %85 = vperm.xlu0 %1624, %v50_v13  }
  0x27   :  { %1445 = vmatpush3.bf16.msra.mxu0 %v1630_v17 }
  0x28   :  { %1446 = vmatprep.subr.bf16.mxu0 %v1631_v20 }
  0x29   :  { %94 = vperm.xlu1 %1625, %v53_v15   ;;  %91 = vperm.xlu0 %1624, %v52_v16  }
  0x2b   :  { %1447 = vmatpush3.bf16.msra.mxu0 %v1631_v20 }
  0x2c   :  { %1448 = vmatprep.subr.bf16.mxu0 %v1632_v23 }
  0x2d   :  { %100 = vperm.xlu1 %1625, %v55_v18   ;;  %97 = vperm.xlu0 %1624, %v54_v19  }
  0x2f   :  { %1449 = vmatpush3.bf16.msra.mxu0 %v1632_v23 }
  0x30   :  { %1450 = vmatprep.subr.bf16.mxu0 %v1633_v24 }
  0x31   :  { %106 = vperm.xlu1 %1625, %v57_v21   ;;  %103 = vperm.xlu0 %1624, %v56_v22  }
  0x33   :  { %1451 = vmatpush3.bf16.msra.mxu0 %v1633_v24 }
  0x34   :  { %1468 = vmatprep.subr.bf16.mxu0 %v1636_v46 }
  0x94   :  { %v68_v26 = vpop.permute.xlu1 %67  ;;  %v62_v27 = vpop.permute.xlu0 %61 }
  0x95   :  { %vm110_vm0 = vcmp.eq.s32.totalorder %v59_v28, %v68_v26  ;;  %vm108_vm3 = vcmp.eq.s32.totalorder %v59_v28, %v62_v27 }
  0x98   :  { %v71_v29 = vpop.permute.xlu1 %70  ;;  %v65_v30 = vpop.permute.xlu0 %64 }
  0x99   :  { %vm111_vm1 = vcmp.eq.s32.totalorder %v59_v28, %v71_v29  ;;  %vm109_vm2 = vcmp.eq.s32.totalorder %v59_v28, %v65_v30 }
  0x9a   :  { %vm1307_vm4 = vmpackc.low %vm111_vm1, %vm110_vm0 }
  0x9b   :  { %vm1305_vm5 = vmpackc.low %vm109_vm2, %vm108_vm3 }
  0x9c   :  { %1452 = vmatprep.mubr.msk.bf16.mxu0 %vm1305_vm5, %v1702_v31  ;;  %v77_v32 = vpop.permute.xlu1 %76  ;;  %v74_v33 = vpop.permute.xlu0 %73 }
  0x9d   :  { %vm113_vm6 = vcmp.eq.s32.totalorder %v59_v28, %v77_v32  ;;  %1453 = vmatmul.mubr.msk.bf16.vlgmr.msra.gmra.mrb[0].mxu0 %vm1307_vm4, %v1702_v31  ;;  %vm112_vm7 = vcmp.eq.s32.totalorder %v59_v28, %v74_v33 }
  0x9e   :  { %vm1309_vm8 = vmpackc.low %vm113_vm6, %vm112_vm7  ;;  %1469 = vmatpush3.bf16.msra.mxu0 %v1636_v46 }
  0x9f   :  { %1456 = vmatprep.mubr.msk.bf16.mxu0 %vm1309_vm8, %v1702_v31  ;;  %1470 = vmatprep.subr.bf16.mxu0 %v1638_v48  ;;  %vm309_vm8 = vcmask 261120  }
  0xa0   :  { %v83_v34 = vpop.permute.xlu1 %82  ;;  %v80_v35 = vpop.permute.xlu0 %79  ;;  %326 = vst.msk [vmem:[#allocation2 + $0x80] sm:$0xff] %vm309_vm8, %v1703_v49 }
  0xa1   :  { %vm115_vm9 = vcmp.eq.s32.totalorder %v59_v28, %v83_v34  ;;  %vm114_vm10 = vcmp.eq.s32.totalorder %v59_v28, %v80_v35 }
  0xa2   :  { %vm1311_vm11 = vmpackc.low %vm115_vm9, %vm114_vm10  ;;  %1471 = vmatpush3.bf16.msra.mxu0 %v1638_v48  ;;  %vm1704_vm9 = vmmov 0   ;;  %vm1177_vm10 = vcmask 1041409  }
  0xa3   :  { %1548 = vmatprep.subr.bf16.mxu0 %v1703_v49 }
  0xa4   :  { %v89_v36 = vpop.permute.xlu1 %88  ;;  %v86_v37 = vpop.permute.xlu0 %85 }
  0xa5   :  { %vm117_vm12 = vcmp.eq.s32.totalorder %v59_v28, %v89_v36  ;;  %1457 = vmatmul.mubr.msk.bf16.gmra.mrb[4].mxu0 %vm1311_vm11, %v1702_v31  ;;  %vm116_vm13 = vcmp.eq.s32.totalorder %v59_v28, %v86_v37  ;;  %vm1179_vm11 = vcmask 1042434  }
  0xa6   :  { %vm1313_vm14 = vmpackc.low %vm117_vm12, %vm116_vm13  ;;  %vm1181_vm12 = vcmask 1043459   ;;  %vm1183_vm13 = vcmask 1044484  }
  0xa7   :  { %1460 = vmatprep.mubr.msk.bf16.mxu0 %vm1313_vm14, %v1702_v31  ;;  %vm1185_vm14 = vcmask 1045509  }
  0xa8   :  { %v95_v38 = vpop.permute.xlu1 %94  ;;  %v92_v39 = vpop.permute.xlu0 %91 }
  0xa9   :  { %vm119_vm15 = vcmp.eq.s32.totalorder %v59_v28, %v95_v38  ;;  %vm118_vm0 = vcmp.eq.s32.totalorder %v59_v28, %v92_v39 }
  0xaa   :  { %vm1315_vm1 = vmpackc.low %vm119_vm15, %vm118_vm0  ;;  %vm1187_vm15 = vcmask 1046534   ;;  %vm1189_vm0 = vcmask 1047559  }
  0xac   :  { %v101_v40 = vpop.permute.xlu1 %100  ;;  %v98_v41 = vpop.permute.xlu0 %97 }
  0xad   :  { %vm121_vm2 = vcmp.eq.s32.totalorder %v59_v28, %v101_v40  ;;  %1461 = vmatmul.mubr.msk.bf16.gmra.mrb[8].mxu0 %vm1315_vm1, %v1702_v31  ;;  %vm120_vm3 = vcmp.eq.s32.totalorder %v59_v28, %v98_v41 }
  0xae   :  { %vm1317_vm4 = vmpackc.low %vm121_vm2, %vm120_vm3 }
  0xaf   :  { %1464 = vmatprep.mubr.msk.bf16.mxu0 %vm1317_vm4, %v1702_v31 }
  0xb0   :  { %v107_v42 = vpop.permute.xlu1 %106  ;;  %v104_v43 = vpop.permute.xlu0 %103 }
  0xb1   :  { %vm123_vm5 = vcmp.eq.s32.totalorder %v59_v28, %v107_v42  ;;  %vm122_vm6 = vcmp.eq.s32.totalorder %v59_v28, %v104_v43 }
  0xb2   :  { %vm1319_vm7 = vmpackc.low %vm123_vm5, %vm122_vm6 }
  0xb5   :  { %1465 = vmatmul.mubr.msk.bf16.gmra.mrb[12].mxu0 %vm1319_vm7, %v1702_v31 }
 0x170   :  { %v1454_v50 = vpop.f32.mrb[0].mxu0 }
 0x171   :  { %312 = vst.msk [vmem:[#allocation2 + $0x10] sm:$0xff] %vm309_vm8, %v1454_v50  ;;  %v246_v51 = vpop.f32.mrb[1].mxu0 }
 0x172   :  { %310 = vst.msk [vmem:[#allocation2] sm:$0xff] %vm309_vm8, %v246_v51  ;;  %v1455_v52 = vpop.f32.mrb[2].mxu0 }
 0x173   :  { %313 = vst.msk [vmem:[#allocation2 + $0x18] sm:$0xff] %vm309_vm8, %v1455_v52  ;;  %v249_v53 = vpop.f32.mrb[3].mxu0 }
 0x174   :  { %311 = vst.msk [vmem:[#allocation2 + $0x8] sm:$0xff] %vm309_vm8, %v249_v53 }
 0x178   :  { %v1458_v54 = vpop.f32.mrb[4].mxu0  ;;  %v329_v1 = vld [vmem:[#allocation2 + $0x10] sm:$0xff] }
 0x179   :  { %316 = vst.msk [vmem:[#allocation2 + $0x30] sm:$0xff] %vm309_vm8, %v1458_v54  ;;  %v262_v55 = vpop.f32.mrb[5].mxu0  ;;  %v327_v57 = vld [vmem:[#allocation2] sm:$0xff] }
 0x17a   :  { %314 = vst.msk [vmem:[#allocation2 + $0x20] sm:$0xff] %vm309_vm8, %v262_v55  ;;  %v1459_v56 = vpop.f32.mrb[6].mxu0  ;;  %v330_v58 = vld [vmem:[#allocation2 + $0x18] sm:$0xff] }
 0x17b   :  { %317 = vst.msk [vmem:[#allocation2 + $0x38] sm:$0xff] %vm309_vm8, %v1459_v56  ;;  %v265_v59 = vpop.f32.mrb[7].mxu0  ;;  %v355_v60 = vld [vmem:[#allocation2 + $0x1] sm:$0xff]  ;;  %v356_v61 = vld [vmem:[#allocation2 + $0x9] sm:$0xff]  ;;  %v344_v2 = vpack.c.bf16 %v330_v58, %v329_v1  ;;  %v357_v6 = vld [vmem:[#allocation2 + $0x11] sm:$0xff] }
 0x17c   :  { %v328_v62 = vld [vmem:[#allocation2 + $0x8] sm:$0xff]  ;;  %315 = vst.msk [vmem:[#allocation2 + $0x28] sm:$0xff] %vm309_vm8, %v265_v59  ;;  %v371_v63 = vpack.c.bf16 %v356_v61, %v355_v60  ;;  %v651_v59 = vld [vmem:[#allocation2 + $0x12] sm:$0xff] }
 0x17d   :  { %v343_v0 = vpack.c.bf16 %v328_v62, %v327_v57  ;;  %v649_v39 = vld [vmem:[#allocation2 + $0x2] sm:$0xff]  ;;  %v650_v43 = vld [vmem:[#allocation2 + $0xa] sm:$0xff]  ;;  %v1641_v61 = vld [vmem:[%s2028_s2 + $0x38] sm:$0xff]  }
 0x17e   :  { %1472 = vmatprep.mubr.msk.bf16.mxu0 %vm309_vm8, %v371_v63  ;;  %v665_v52 = vpack.c.bf16 %v650_v43, %v649_v39  ;;  %v1643_v39 = vld [vmem:[#allocation3 + $0x8] sm:$0xff]  }
 0x17f   :  { %1492 = vmatprep.mubr.msk.bf16.mxu1 %vm309_vm8, %v343_v0  ;;  %v1647_v43 = vld [vmem:[#allocation3 + $0x28] sm:$0xff]  }
 0x180   :  { %1493 = vmatmul.mubr.msk.bf16.vlgmr.msra.gmra.mrb[0].mxu1 %vm309_vm8, %v344_v2  ;;  %v1462_v4 = vpop.f32.mrb[8].mxu0  ;;  %v333_v19 = vld [vmem:[#allocation2 + $0x30] sm:$0xff] }
 0x181   :  { %1509 = vmatpush3.bf16.msra.mxu1 %v1637_v47  ;;  %320 = vst.msk [vmem:[#allocation2 + $0x50] sm:$0xff] %vm309_vm8, %v1462_v4  ;;  %v278_v5 = vpop.f32.mrb[9].mxu0  ;;  %v358_v7 = vld [vmem:[#allocation2 + $0x19] sm:$0xff] }
 0x182   :  { %1510 = vmatprep.subr.bf16.mxu1 %v1639_v3  ;;  %318 = vst.msk [vmem:[#allocation2 + $0x40] sm:$0xff] %vm309_vm8, %v278_v5  ;;  %v1463_v9 = vpop.f32.mrb[10].mxu0  ;;  %v372_v10 = vpack.c.bf16 %v358_v7, %v357_v6  ;;  %v331_v11 = vld [vmem:[#allocation2 + $0x20] sm:$0xff]  ;;  %v334_v12 = vld [vmem:[#allocation2 + $0x38] sm:$0xff] }
 0x183   :  { %321 = vst.msk [vmem:[#allocation2 + $0x58] sm:$0xff] %vm309_vm8, %v1463_v9  ;;  %v281_v13 = vpop.f32.mrb[11].mxu0  ;;  %v359_v14 = vld [vmem:[#allocation2 + $0x21] sm:$0xff]  ;;  %v360_v15 = vld [vmem:[#allocation2 + $0x29] sm:$0xff]  ;;  %v346_v20 = vpack.c.bf16 %v334_v12, %v333_v19  ;;  %v361_v23 = vld [vmem:[#allocation2 + $0x31] sm:$0xff] }
 0x184   :  { %v332_v16 = vld [vmem:[#allocation2 + $0x28] sm:$0xff]  ;;  %319 = vst.msk [vmem:[#allocation2 + $0x48] sm:$0xff] %vm309_vm8, %v281_v13  ;;  %1473 = vmatmul.mubr.msk.bf16.vlgmr.msra.gmra.mrb[16].mxu0 %vm309_vm8, %v372_v10  ;;  %v373_v17 = vpack.c.bf16 %v360_v15, %v359_v14  ;;  %v652_v56 = vld [vmem:[#allocation2 + $0x1a] sm:$0xff]  ;;  %v655_v2 = vld [vmem:[#allocation2 + $0x32] sm:$0xff] }
 0x185   :  { %v345_v18 = vpack.c.bf16 %v332_v16, %v331_v11  ;;  %1511 = vmatpush3.bf16.msra.mxu1 %v1639_v3  ;;  %v653_v57 = vld [vmem:[#allocation2 + $0x22] sm:$0xff]  ;;  %v654_v58 = vld [vmem:[#allocation2 + $0x2a] sm:$0xff]  ;;  %v666_v60 = vpack.c.bf16 %v652_v56, %v651_v59 }
 0x186   :  { %1528 = vmatprep.subr.bf16.mxu1 %v1866_v8  ;;  %1476 = vmatprep.mubr.msk.bf16.mxu0 %vm309_vm8, %v373_v17  ;;  %v667_v62 = vpack.c.bf16 %v654_v58, %v653_v57  ;;  %v826_v13 = vld [vmem:[#allocation2 + $0x3] sm:$0xff]  ;;  %v827_v14 = vld [vmem:[#allocation2 + $0xb] sm:$0xff]  ;;  %v829_v17 = vld [vmem:[#allocation2 + $0x1b] sm:$0xff] }
 0x187   :  { %1496 = vmatprep.mubr.msk.bf16.mxu1 %vm309_vm8, %v345_v18  ;;  %v842_v16 = vpack.c.bf16 %v827_v14, %v826_v13  ;;  %v830_v18 = vld [vmem:[#allocation2 + $0x23] sm:$0xff]  ;;  %v831_v19 = vld [vmem:[#allocation2 + $0x2b] sm:$0xff]  ;;  %v1045_v13 = vld [vmem:[%s2030_s4 + $0x18] sm:$0xff] }
 0x188   :  { %1497 = vmatmul.mubr.msk.bf16.gmra.mrb[4].mxu1 %vm309_vm8, %v346_v20  ;;  %v1466_v21 = vpop.f32.mrb[12].mxu0  ;;  %v337_v35 = vld [vmem:[#allocation2 + $0x50] sm:$0xff] }
 0x189   :  { %324 = vst.msk [vmem:[#allocation2 + $0x70] sm:$0xff] %vm309_vm8, %v1466_v21  ;;  %v294_v22 = vpop.f32.mrb[13].mxu0  ;;  %v362_v24 = vld [vmem:[#allocation2 + $0x39] sm:$0xff] }
 0x18a   :  { %322 = vst.msk [vmem:[#allocation2 + $0x60] sm:$0xff] %vm309_vm8, %v294_v22  ;;  %v1467_v25 = vpop.f32.mrb[14].mxu0  ;;  %v374_v26 = vpack.c.bf16 %v362_v24, %v361_v23  ;;  %v335_v27 = vld [vmem:[#allocation2 + $0x40] sm:$0xff]  ;;  %v338_v28 = vld [vmem:[#allocation2 + $0x58] sm:$0xff]  ;;  %v844_v22 = vpack.c.bf16 %v831_v19, %v830_v18 }
 0x18b   :  { %325 = vst.msk [vmem:[#allocation2 + $0x78] sm:$0xff] %vm309_vm8, %v1467_v25  ;;  %v297_v29 = vpop.f32.mrb[15].mxu0  ;;  %v363_v30 = vld [vmem:[#allocation2 + $0x41] sm:$0xff]  ;;  %v364_v31 = vld [vmem:[#allocation2 + $0x49] sm:$0xff]  ;;  %v348_v36 = vpack.c.bf16 %v338_v28, %v337_v35  ;;  %v365_v37 = vld [vmem:[#allocation2 + $0x51] sm:$0xff] }
 0x18c   :  { %v336_v32 = vld [vmem:[#allocation2 + $0x48] sm:$0xff]  ;;  %323 = vst.msk [vmem:[#allocation2 + $0x68] sm:$0xff] %vm309_vm8, %v297_v29  ;;  %1477 = vmatmul.mubr.msk.bf16.gmra.mrb[20].mxu0 %vm309_vm8, %v374_v26  ;;  %v375_v33 = vpack.c.bf16 %v364_v31, %v363_v30  ;;  %v656_v63 = vld [vmem:[#allocation2 + $0x3a] sm:$0xff]  ;;  %v659_v9 = vld [vmem:[#allocation2 + $0x52] sm:$0xff] }
 0x18d   :  { %v347_v34 = vpack.c.bf16 %v336_v32, %v335_v27  ;;  %v657_v0 = vld [vmem:[#allocation2 + $0x42] sm:$0xff]  ;;  %v658_v1 = vld [vmem:[#allocation2 + $0x4a] sm:$0xff]  ;;  %v668_v3 = vpack.c.bf16 %v656_v63, %v655_v2  ;;  %v828_v20 = vld [vmem:[#allocation2 + $0x13] sm:$0xff] }
 0x18e   :  { %1480 = vmatprep.mubr.msk.bf16.mxu0 %vm309_vm8, %v375_v33  ;;  %v669_v4 = vpack.c.bf16 %v658_v1, %v657_v0  ;;  %v843_v21 = vpack.c.bf16 %v829_v17, %v828_v20  ;;  %v833_v23 = vld [vmem:[#allocation2 + $0x3b] sm:$0xff]  ;;  %v834_v24 = vld [vmem:[#allocation2 + $0x43] sm:$0xff]  ;;  %v835_v25 = vld [vmem:[#allocation2 + $0x4b] sm:$0xff] }
 0x18f   :  { %1500 = vmatprep.mubr.msk.bf16.mxu1 %vm309_vm8, %v347_v34  ;;  %v832_v26 = vld [vmem:[#allocation2 + $0x33] sm:$0xff]  ;;  %v846_v28 = vpack.c.bf16 %v835_v25, %v834_v24  ;;  %v1936_v63 = vld [vmem:[%s2029_s3] ss:$0 sm:$0xff]  ;;  %v1043_v17 = vld [vmem:[%s2030_s4 + $0x8] sm:$0xff] }
 0x190   :  { %1501 = vmatmul.mubr.msk.bf16.gmra.mrb[8].mxu1 %vm309_vm8, %v348_v36  ;;  %v341_v50 = vld [vmem:[#allocation2 + $0x70] sm:$0xff]  ;;  %v845_v27 = vpack.c.bf16 %v833_v23, %v832_v26 }
 0x191   :  { %v366_v38 = vld [vmem:[#allocation2 + $0x59] sm:$0xff] }
 0x192   :  { %v376_v40 = vpack.c.bf16 %v366_v38, %v365_v37  ;;  %v339_v41 = vld [vmem:[#allocation2 + $0x60] sm:$0xff]  ;;  %v342_v42 = vld [vmem:[#allocation2 + $0x78] sm:$0xff]  ;;  %v1642_v38 = vld [vmem:[#allocation3] sm:$0xff]  }
 0x193   :  { %v367_v44 = vld [vmem:[#allocation2 + $0x61] sm:$0xff]  ;;  %v368_v45 = vld [vmem:[#allocation2 + $0x69] sm:$0xff]  ;;  %v350_v51 = vpack.c.bf16 %v342_v42, %v341_v50  ;;  %v369_v53 = vld [vmem:[#allocation2 + $0x71] sm:$0xff]  ;;  %1549 = vmatpush3.bf16.msra.mxu0 %v1642_v38 }
 0x194   :  { %v340_v46 = vld [vmem:[#allocation2 + $0x68] sm:$0xff]  ;;  %1481 = vmatmul.mubr.msk.bf16.gmra.mrb[24].mxu0 %vm309_vm8, %v376_v40  ;;  %v377_v47 = vpack.c.bf16 %v368_v45, %v367_v44  ;;  %v370_v54 = vld [vmem:[#allocation2 + $0x79] sm:$0xff]  ;;  %1550 = vmatprep.subr.bf16.mxu0 %v1703_v49 }
 0x195   :  { %v349_v48 = vpack.c.bf16 %v340_v46, %v339_v41  ;;  %v378_v55 = vpack.c.bf16 %v370_v54, %v369_v53  ;;  %v660_v5 = vld [vmem:[#allocation2 + $0x5a] sm:$0xff]  ;;  %v661_v6 = vld [vmem:[#allocation2 + $0x62] sm:$0xff]  ;;  %v662_v7 = vld [vmem:[#allocation2 + $0x6a] sm:$0xff] }
 0x196   :  { %1484 = vmatprep.mubr.msk.bf16.mxu0 %vm309_vm8, %v377_v47  ;;  %v670_v10 = vpack.c.bf16 %v660_v5, %v659_v9  ;;  %v663_v11 = vld [vmem:[#allocation2 + $0x72] sm:$0xff]  ;;  %v664_v12 = vld [vmem:[#allocation2 + $0x7a] sm:$0xff]  ;;  %v838_v30 = vld [vmem:[#allocation2 + $0x63] sm:$0xff] }
 0x197   :  { %1504 = vmatprep.mubr.msk.bf16.mxu1 %vm309_vm8, %v349_v48  ;;  %v672_v15 = vpack.c.bf16 %v664_v12, %v663_v11  ;;  %v837_v29 = vld [vmem:[#allocation2 + $0x5b] sm:$0xff]  ;;  %v839_v31 = vld [vmem:[#allocation2 + $0x6b] sm:$0xff]  ;;  %v836_v32 = vld [vmem:[#allocation2 + $0x53] sm:$0xff]  ;;  %1551 = vmatpush3.bf16.msra.mxu0 %v1643_v39 }
 0x198   :  { %1505 = vmatmul.mubr.msk.bf16.gmra.mrb[12].mxu1 %vm309_vm8, %v350_v51  ;;  %v847_v33 = vpack.c.bf16 %v837_v29, %v836_v32  ;;  %v848_v34 = vpack.c.bf16 %v839_v31, %v838_v30  ;;  %v840_v35 = vld [vmem:[#allocation2 + $0x73] sm:$0xff]  ;;  %v841_v36 = vld [vmem:[#allocation2 + $0x7b] sm:$0xff]  ;;  %1552 = vmatprep.subr.bf16.mxu0 %v1703_v49  ;;  %v1646_v42 = vld [vmem:[#allocation3 + $0x20] sm:$0xff]  }
 0x199   :  { %1512 = vmatprep.mubr.msk.bf16.mxu1 %vm309_vm8, %v665_v52  ;;  %v849_v37 = vpack.c.bf16 %v841_v36, %v840_v35  ;;  %v1644_v40 = vld [vmem:[#allocation3 + $0x10] sm:$0xff]   ;;  %v1645_v41 = vld [vmem:[#allocation3 + $0x18] sm:$0xff]   ;;  %v1044_v11 = vld [vmem:[%s2030_s4 + $0x10] sm:$0xff] }
 0x19a   :  { %v1648_v44 = vld [vmem:[#allocation3 + $0x30] sm:$0xff]   ;;  %v1649_v45 = vld [vmem:[#allocation3 + $0x38] sm:$0xff]   ;;  %v1048_v39 = vld [vmem:[%s2030_s4 + $0x30] sm:$0xff] }
 0x19b   :  { %1553 = vmatpush3.bf16.msra.mxu0 %v1644_v40 }
 0x19c   :  { %1485 = vmatmul.mubr.msk.bf16.gmra.mrb[28].mxu0 %vm309_vm8, %v378_v55  ;;  %1554 = vmatprep.subr.bf16.mxu0 %v1703_v49 }
 0x19d   :  { %1564 = vmatprep.mubr.msk.bf16.mxu0 %vm1704_vm9, %v1703_v49 }
 0x19f   :  { %1555 = vmatpush3.bf16.msra.mxu0 %v1645_v41  ;;  %v1049_v41 = vld [vmem:[%s2030_s4 + $0x38] sm:$0xff] }
 0x1a0   :  { %1513 = vmatmul.mubr.msk.bf16.vlgmr.msra.gmra.mrb[0].mxu1 %vm309_vm8, %v666_v60  ;;  %1556 = vmatprep.subr.bf16.mxu0 %v1703_v49 }
 0x1a1   :  { %1529 = vmatpush3.bf16.msra.mxu1 %v1866_v8  ;;  %1516 = vmatprep.mubr.msk.bf16.mxu1 %vm309_vm8, %v667_v62  ;;  %v671_v8 = vpack.c.bf16 %v662_v7, %v661_v6 }
 0x1a2   :  { %1530 = vmatprep.subr.bf16.mxu1 %v1641_v61 }
 0x1a3   :  { %1557 = vmatpush3.bf16.msra.mxu0 %v1646_v42 }
 0x1a4   :  { %1558 = vmatprep.subr.bf16.mxu0 %v1703_v49 }
 0x1a5   :  { %1531 = vmatpush3.bf16.msra.mxu1 %v1641_v61 }
 0x1a7   :  { %1559 = vmatpush3.bf16.msra.mxu0 %v1647_v43 }
 0x1a8   :  { %1517 = vmatmul.mubr.msk.bf16.gmra.mrb[4].mxu1 %vm309_vm8, %v668_v3  ;;  %1560 = vmatprep.subr.bf16.mxu0 %v1703_v49 }
 0x1a9   :  { %1520 = vmatprep.mubr.msk.bf16.mxu1 %vm309_vm8, %v669_v4 }
 0x1ab   :  { %1561 = vmatpush3.bf16.msra.mxu0 %v1648_v44  ;;  %v1046_v44 = vld [vmem:[%s2030_s4 + $0x20] sm:$0xff] }
 0x1ac   :  { %1562 = vmatprep.subr.bf16.mxu0 %v1703_v49 }
 0x1af   :  { %1563 = vmatpush3.bf16.msra.mxu0 %v1649_v45 }
 0x1b0   :  { %1521 = vmatmul.mubr.msk.bf16.gmra.mrb[8].mxu1 %vm309_vm8, %v670_v10 }
 0x1b1   :  { %1524 = vmatprep.mubr.msk.bf16.mxu1 %vm309_vm8, %v671_v8 }
 0x1b8   :  { %1525 = vmatmul.mubr.msk.bf16.gmra.mrb[12].mxu1 %vm309_vm8, %v672_v15  ;;  %v1042_v15 = vld [vmem:[%s2030_s4] sm:$0xff] }
 0x1b9   :  { %1532 = vmatprep.mubr.msk.bf16.mxu1 %vm309_vm8, %v842_v16 }
 0x1c0   :  { %1533 = vmatmul.mubr.msk.bf16.vlgmr.msra.gmra.mrb[0].mxu1 %vm309_vm8, %v843_v21 }
 0x1c1   :  { %1536 = vmatprep.mubr.msk.bf16.mxu1 %vm309_vm8, %v844_v22 }
 0x1c8   :  { %1537 = vmatmul.mubr.msk.bf16.gmra.mrb[4].mxu1 %vm309_vm8, %v845_v27 }
 0x1c9   :  { %1540 = vmatprep.mubr.msk.bf16.mxu1 %vm309_vm8, %v846_v28 }
 0x1d0   :  { %1541 = vmatmul.mubr.msk.bf16.gmra.mrb[8].mxu1 %vm309_vm8, %v847_v33 }
 0x1d1   :  { %1544 = vmatprep.mubr.msk.bf16.mxu1 %vm309_vm8, %v848_v34 }
 0x1d8   :  { %1545 = vmatmul.mubr.msk.bf16.gmra.mrb[12].mxu1 %vm309_vm8, %v849_v37 }
 0x257   :  { %v1474_v46 = vpop.f32.mrb[16].mxu0 }
 0x258   :  { %v453_v47 = vpop.f32.mrb[17].mxu0 }
 0x259   :  { %v1475_v48 = vpop.f32.mrb[18].mxu0 }
 0x25a   :  { %v456_v50 = vpop.f32.mrb[19].mxu0 }
 0x25f   :  { %v1478_v51 = vpop.f32.mrb[20].mxu0 }
 0x260   :  { %v469_v52 = vpop.f32.mrb[21].mxu0 }
 0x261   :  { %v1479_v53 = vpop.f32.mrb[22].mxu0 }
 0x262   :  { %v472_v54 = vpop.f32.mrb[23].mxu0 }
 0x267   :  { %v1917_v55 = vpop.f32.mrb[24].mxu0 }
 0x268   :  { %v1919_v56 = vpop.f32.mrb[25].mxu0 }
 0x269   :  { %v1921_v57 = vpop.f32.mrb[26].mxu0 }
 0x26a   :  { %v1923_v58 = vpop.f32.mrb[27].mxu0 }
 0x26f   :  { %v1925_v59 = vpop.f32.mrb[28].mxu0 }
 0x270   :  { %v1927_v49 = vpop.f32.mrb[29].mxu0 }
 0x271   :  { %v1929_v60 = vpop.f32.mrb[30].mxu0 }
 0x272   :  { %v1931_v61 = vpop.f32.mrb[31].mxu0 }
 0x293   :  { %v1534_v62 = vpop.f32.mrb[0].mxu1 }
 0x294   :  { %v1568_v0 = vadd.f32 %v1534_v62, %v1474_v46  ;;  %v924_v1 = vpop.f32.mrb[1].mxu1  ;;  %v1047_v46 = vld [vmem:[%s2030_s4 + $0x28] sm:$0xff] }
 0x295   :  { %v1569_v2 = vadd.f32 %v924_v1, %v453_v47  ;;  %v1535_v3 = vpop.f32.mrb[2].mxu1 }
 0x296   :  { %v1012_v4 = vadd.f32 %v1568_v0, %v1936_v63  ;;  %v1570_v5 = vadd.f32 %v1535_v3, %v1475_v48  ;;  %v927_v6 = vpop.f32.mrb[3].mxu1 }
 0x297   :  { %v1010_v7 = vadd.f32 %v1569_v2, %v1936_v63  ;;  %v1571_v9 = vadd.f32 %v927_v6, %v456_v50 }
 0x298   :  { %v1028_v10 = vmax.f32 %v1012_v4, 0.0  ;;  %v1013_v8 = vadd.f32 %v1570_v5, %v1936_v63 }
 0x299   :  { %v1026_v12 = vmax.f32 %v1010_v7, 0.0  ;;  %v1011_v14 = vadd.f32 %v1571_v9, %v1936_v63 }
 0x29a   :  { %v1029_v16 = vmax.f32 %v1013_v8, 0.0  ;;  %v1060_v20 = vmul.f32 %v1044_v11, %v1028_v10 }
 0x29b   :  { %v1027_v18 = vmax.f32 %v1011_v14, 0.0  ;;  %v1538_v19 = vpop.f32.mrb[4].mxu1  ;;  %v1058_v24 = vmul.f32 %v1042_v15, %v1026_v12 }
 0x29c   :  { %v1061_v21 = vmul.f32 %v1045_v13, %v1029_v16  ;;  %v1572_v22 = vadd.f32 %v1538_v19, %v1478_v51  ;;  %v940_v23 = vpop.f32.mrb[5].mxu1  ;;  %v1050_v16 = vld [vmem:[%s2030_s4 + $0x40] sm:$0xff] }
 0x29d   :  { %v1059_v25 = vmul.f32 %v1043_v17, %v1027_v18  ;;  %v1573_v26 = vadd.f32 %v940_v23, %v469_v52  ;;  %v1539_v27 = vpop.f32.mrb[6].mxu1 }
 0x29e   :  { %v1081_v28 = vmax.f32 %v1060_v20, %v1061_v21  ;;  %v1016_v29 = vadd.f32 %v1572_v22, %v1936_v63  ;;  %v1574_v30 = vadd.f32 %v1539_v27, %v1479_v53  ;;  %v943_v31 = vpop.f32.mrb[7].mxu1  ;;  %v1053_v20 = vld [vmem:[%s2030_s4 + $0x58] sm:$0xff] }
 0x29f   :  { %v1074_v32 = vmax.f32 %v1058_v24, %v1059_v25  ;;  %v1014_v33 = vadd.f32 %v1573_v26, %v1936_v63  ;;  %v1575_v34 = vadd.f32 %v943_v31, %v472_v54  ;;  %v1051_v25 = vld [vmem:[%s2030_s4 + $0x48] sm:$0xff] }
 0x2a0   :  { %v1082_v35 = vrot.slane %v1081_v28, 4  ;;  %v1032_v36 = vmax.f32 %v1016_v29, 0.0  ;;  %v1017_v37 = vadd.f32 %v1574_v30, %v1936_v63 }
 0x2a1   :  { %v1075_v38 = vrot.slane %v1074_v32, 4  ;;  %v1030_v40 = vmax.f32 %v1014_v33, 0.0  ;;  %v1015_v42 = vadd.f32 %v1575_v34, %v1936_v63 }
 0x2a2   :  { %v1083_v43 = vmax.f32 %v1081_v28, %v1082_v35  ;;  %v1033_v45 = vmax.f32 %v1017_v37, 0.0  ;;  %v1064_v52 = vmul.f32 %v1048_v39, %v1032_v36 }
 0x2a3   :  { %v1076_v47 = vmax.f32 %v1074_v32, %v1075_v38  ;;  %v1031_v48 = vmax.f32 %v1015_v42, 0.0  ;;  %v1542_v50 = vpop.f32.mrb[8].mxu1  ;;  %v1062_v1 = vmul.f32 %v1046_v44, %v1030_v40 }
 0x2a4   :  { %v1084_v51 = vrot.slane %v1083_v43, 2  ;;  %v1065_v53 = vmul.f32 %v1049_v41, %v1033_v45  ;;  %v1576_v54 = vadd.f32 %v1542_v50, %v1917_v55  ;;  %v956_v62 = vpop.f32.mrb[9].mxu1  ;;  %v1052_v55 = vld [vmem:[%s2030_s4 + $0x50] sm:$0xff] }
 0x2a5   :  { %v1077_v0 = vrot.slane %v1076_v47, 2  ;;  %v1063_v2 = vmul.f32 %v1047_v46, %v1031_v48  ;;  %v1577_v3 = vadd.f32 %v956_v62, %v1919_v56  ;;  %v1543_v4 = vpop.f32.mrb[10].mxu1 }
 0x2a6   :  { %v1085_v5 = vmax.f32 %v1083_v43, %v1084_v51  ;;  %v1095_v6 = vmax.f32 %v1064_v52, %v1065_v53  ;;  %v1020_v7 = vadd.f32 %v1576_v54, %v1936_v63  ;;  %v1578_v9 = vadd.f32 %v1543_v4, %v1921_v57  ;;  %v959_v10 = vpop.f32.mrb[11].mxu1 }
 0x2a7   :  { %v1078_v8 = vmax.f32 %v1076_v47, %v1077_v0  ;;  %v1088_v11 = vmax.f32 %v1062_v1, %v1063_v2  ;;  %v1018_v12 = vadd.f32 %v1577_v3, %v1936_v63  ;;  %v1579_v13 = vadd.f32 %v959_v10, %v1923_v58 }
 0x2a8   :  { %v1086_v56 = vrot.slane %v1085_v5, 1  ;;  %v1096_v14 = vrot.slane %v1095_v6, 4  ;;  %v1036_v15 = vmax.f32 %v1020_v7, 0.0  ;;  %v1021_v57 = vadd.f32 %v1578_v9, %v1936_v63 }
 0x2a9   :  { %v1079_v17 = vrot.slane %v1078_v8, 1  ;;  %v1089_v18 = vrot.slane %v1088_v11, 4  ;;  %v1034_v19 = vmax.f32 %v1018_v12, 0.0  ;;  %v1019_v21 = vadd.f32 %v1579_v13, %v1936_v63 }
 0x2aa   :  { %v1087_v22 = vmax.f32 %v1085_v5, %v1086_v56  ;;  %v1097_v58 = vmax.f32 %v1095_v6, %v1096_v14  ;;  %v1068_v23 = vmul.f32 %v1052_v55, %v1036_v15  ;;  %v1037_v24 = vmax.f32 %v1021_v57, 0.0  ;;  %v1056_v5 = vld [vmem:[%s2030_s4 + $0x70] sm:$0xff]  ;;  %v1054_v14 = vld [vmem:[%s2030_s4 + $0x60] sm:$0xff] }
 0x2ab   :  { %v1080_v26 = vmax.f32 %v1078_v8, %v1079_v17  ;;  %v1090_v27 = vmax.f32 %v1088_v11, %v1089_v18  ;;  %v1066_v28 = vmul.f32 %v1050_v16, %v1034_v19  ;;  %v1035_v29 = vmax.f32 %v1019_v21, 0.0  ;;  %v1546_v30 = vpop.f32.mrb[12].mxu1 }
 0x2ac   :  { %v1131_v31 = vpack.c.bf16 %v1087_v22, %v1087_v22  ;;  %v1098_v32 = vrot.slane %v1097_v58, 2  ;;  %v1069_v33 = vmul.f32 %v1053_v20, %v1037_v24  ;;  %v1580_v34 = vadd.f32 %v1546_v30, %v1925_v59  ;;  %v972_v35 = vpop.f32.mrb[13].mxu1 }
 0x2ad   :  { %v1130_v36 = vpack.c.bf16 %v1080_v26, %v1080_v26  ;;  %v1091_v37 = vrot.slane %v1090_v27, 2  ;;  %v1067_v38 = vmul.f32 %v1051_v25, %v1035_v29  ;;  %v1581_v39 = vadd.f32 %v972_v35, %v1927_v49  ;;  %v1547_v40 = vpop.f32.mrb[14].mxu1 }
 0x2ae   :  { %v1170_v41 = vunpack.c.l.b16 %v1131_v31  ;;  %v1099_v42 = vmax.f32 %v1097_v58, %v1098_v32  ;;  %v1109_v43 = vmax.f32 %v1068_v23, %v1069_v33  ;;  %v1024_v44 = vadd.f32 %v1580_v34, %v1936_v63  ;;  %v975_v45 = vpop.f32.mrb[15].mxu1 }
 0x2af   :  { %v1169_v46 = vunpack.c.l.b16 %v1130_v36  ;;  %v1092_v47 = vmax.f32 %v1090_v27, %v1091_v37  ;;  %v1102_v48 = vmax.f32 %v1066_v28, %v1067_v38  ;;  %v1582_v59 = vadd.f32 %v1547_v40, %v1929_v60  ;;  %v1057_v60 = vld [vmem:[%s2030_s4 + $0x78] sm:$0xff] }
 0x2b0   :  { %v1100_v50 = vrot.slane %v1099_v42, 1  ;;  %v1110_v51 = vrot.slane %v1109_v43, 4  ;;  %v1022_v49 = vadd.f32 %v1581_v39, %v1936_v63  ;;  %v1040_v1 = vmax.f32 %v1024_v44, 0.0 }
 0x2b1   :  { %v1178_v52 = vsel %vm1177_vm10, %v1170_v41, %v1169_v46  ;;  %v1093_v53 = vrot.slane %v1092_v47, 1  ;;  %v1103_v54 = vrot.slane %v1102_v48, 4  ;;  %v1025_v2 = vadd.f32 %v1582_v59, %v1936_v63 }
 0x2b2   :  { %v1101_v62 = vmax.f32 %v1099_v42, %v1100_v50  ;;  %v1111_v0 = vmax.f32 %v1109_v43, %v1110_v51  ;;  %v1583_v6 = vadd.f32 %v975_v45, %v1931_v61  ;;  %v1038_v55 = vmax.f32 %v1022_v49, 0.0  ;;  %v1055_v61 = vld [vmem:[%s2030_s4 + $0x68] sm:$0xff] }
 0x2b3   :  { %v1094_v3 = vmax.f32 %v1092_v47, %v1093_v53  ;;  %v1104_v4 = vmax.f32 %v1102_v48, %v1103_v54  ;;  %v1041_v10 = vmax.f32 %v1025_v2, 0.0  ;;  %v1072_v56 = vmul.f32 %v1056_v5, %v1040_v1 }
 0x2b4   :  { %v1133_v7 = vpack.c.bf16 %v1101_v62, %v1101_v62  ;;  %v1112_v9 = vrot.slane %v1111_v0, 2  ;;  %v1023_v12 = vadd.f32 %v1583_v6, %v1936_v63  ;;  %v1070_v22 = vmul.f32 %v1054_v14, %v1038_v55 }
 0x2b5   :  { %v1132_v8 = vpack.c.bf16 %v1094_v3, %v1094_v3  ;;  %v1105_v11 = vrot.slane %v1104_v4, 2  ;;  %v1073_v15 = vmul.f32 %v1057_v60, %v1041_v10 }
 0x2b6   :  { %v1113_v13 = vmax.f32 %v1111_v0, %v1112_v9  ;;  %v1039_v17 = vmax.f32 %v1023_v12, 0.0  ;;  %v1172_v18 = vunpack.c.l.b16 %v1133_v7 }
 0x2b7   :  { %v1171_v16 = vunpack.c.l.b16 %v1132_v8  ;;  %v1106_v57 = vmax.f32 %v1104_v4, %v1105_v11  ;;  %v1123_v20 = vmax.f32 %v1072_v56, %v1073_v15 }
 0x2b8   :  { %v1114_v19 = vrot.slane %v1113_v13, 1  ;;  %v1071_v58 = vmul.f32 %v1055_v61, %v1039_v17 }
 0x2b9   :  { %v1180_v63 = vsel %vm1179_vm11, %v1171_v16, %v1178_v52  ;;  %v1107_v21 = vrot.slane %v1106_v57, 1  ;;  %v1124_v25 = vrot.slane %v1123_v20, 4  ;;  %v1362_v52 = vld [vmem:[%s2032_s6] ss:$0 sm:$0xff] }
 0x2ba   :  { %v1115_v23 = vmax.f32 %v1113_v13, %v1114_v19  ;;  %v1182_v24 = vsel %vm1181_vm12, %v1172_v18, %v1180_v63  ;;  %v1116_v27 = vmax.f32 %v1070_v22, %v1071_v58 }
 0x2bb   :  { %v1108_v26 = vmax.f32 %v1106_v57, %v1107_v21  ;;  %v1125_v29 = vmax.f32 %v1123_v20, %v1124_v25 }
 0x2bc   :  { %v1135_v28 = vpack.c.bf16 %v1115_v23, %v1115_v23  ;;  %v1117_v31 = vrot.slane %v1116_v27, 4 }
 0x2bd   :  { %v1134_v30 = vpack.c.bf16 %v1108_v26, %v1108_v26  ;;  %v1126_v32 = vrot.slane %v1125_v29, 2 }
 0x2be   :  { %v1118_v34 = vmax.f32 %v1116_v27, %v1117_v31  ;;  %v1174_v35 = vunpack.c.l.b16 %v1135_v28 }
 0x2bf   :  { %v1173_v33 = vunpack.c.l.b16 %v1134_v30  ;;  %v1127_v36 = vmax.f32 %v1125_v29, %v1126_v32 }
 0x2c0   :  { %v1119_v38 = vrot.slane %v1118_v34, 2 }
 0x2c1   :  { %v1184_v37 = vsel %vm1183_vm13, %v1173_v33, %v1182_v24  ;;  %v1128_v39 = vrot.slane %v1127_v36, 1 }
 0x2c2   :  { %v1186_v40 = vsel %vm1185_vm14, %v1174_v35, %v1184_v37  ;;  %v1120_v41 = vmax.f32 %v1118_v34, %v1119_v38 }
 0x2c3   :  { %v1129_v42 = vmax.f32 %v1127_v36, %v1128_v39 }
 0x2c4   :  { %v1121_v43 = vrot.slane %v1120_v41, 1 }
 0x2c5   :  { %v1137_v45 = vpack.c.bf16 %v1129_v42, %v1129_v42 }
 0x2c6   :  { %v1122_v44 = vmax.f32 %v1120_v41, %v1121_v43 }
 0x2c7   :  { %v1176_v48 = vunpack.c.l.b16 %v1137_v45 }
 0x2c8   :  { %v1136_v46 = vpack.c.bf16 %v1122_v44, %v1122_v44 }
 0x2ca   :  { %v1175_v47 = vunpack.c.l.b16 %v1136_v46 }
 0x2cc   :  { %v1188_v50 = vsel %vm1187_vm15, %v1175_v47, %v1186_v40 }
 0x2cd   :  { %v1190_v51 = vsel %vm1189_vm0, %v1176_v48, %v1188_v50 }
 0x2ce   :  { %v1191_v59 = vpack.c.b16 %v1190_v51, %v1190_v51 }
 0x2d0   :  { %1565 = vmatmul.mubr.bf16.vlgmr.msra.gmra.mrb[32].mxu0 %v1191_v59 }
 0x3a3   :  { %v1275_v53 = vpop.f32.mrb[32].mxu0 }
 0x3a4   :  { %v1276_v54 = vadd.f32 %v1362_v52, %v1275_v53  ;;  %v1566_v49 = vpop.f32.mrb[33].mxu0 }
 0x3a5   :  { %v1278_v62 = vpop.f32.mrb[34].mxu0 }
 0x3a6   :  { %1281 = vst [vmem:[#allocation6] sm:$0xff] %v1276_v54  ;;  %v1567_v0 = vpop.f32.mrb[35].mxu0 }
 0x3a7   :  { %1683 = shalt.err (!%p1680_p12)
}
 0x3a8   :  { %s1684_s6 = scalar_lea.hbm %s2033_s7, 128 }
 0x3a9   :  { %p1685_p13 = scmp.ne.s32.totalorder %s2033_s7, %s1684_s6  ;;  %p1688_p0 = scmp.lt.u32.totalorder %s1684_s6, %s2033_s7 }
 0x3ab   :  { %p1690_p1 = pnand %p1688_p0, %p1685_p13 }
 0x3ad   :  { %1693 = shalt.err (!%p1690_p1)
}
 0x3ae   :  { %1291 = dma.vmem_to_hbm [thread:$0]  %s1289_s11, 128, %s2033_s7, [#allocation5]  }
 0x3af   :  { %1696 = dma.done.wait [#allocation5], 128  }
 0x3b0   :  { %1697 = vsyncadd [#allocation5], 4294967168 }
 0x3b1   :  { %1295 = vsyncpa [#allocation4], 1 }
 0x3b2   :  { %1296 = vsyncpa [#allocation5], 1 }

</bundles_post_ra>
